<compile_context>
chip_gen: v7x
topology: tpu7x:2x2x1
jax: 0.10.0
libtpu: 0.0.40
codegen_flags: <defaults>
</compile_context>

<pallas_src>
import jax
import jax.numpy as jnp
from jax.experimental import pallas as pl
from jax.experimental.pallas import tpu as pltpu


_LANE_BATCH_THRESHOLD = 1024   # switch to batch-on-lanes layout at/above this B
_SPLIT_THRESHOLD = 512         # min batch before forcing >= 2 parallel tiles


def _round_up(n, m):
    return ((n + m - 1) // m) * m


def _softplus(z):
    # Numerically stable softplus: max(z,0) + log1p(exp(-|z|))
    return jnp.maximum(z, 0.0) + jnp.log1p(jnp.exp(-jnp.abs(z)))


# ---------------------------------------------------------------------------
# Path 1: batch on the sublane axis (small / moderate B).
# ---------------------------------------------------------------------------
def _policy_kernel_rows(x_ref, w1_ref, b1_ref, wh_ref, bh_ref, mu_ref, std_ref):
    # fc1 + bias + ReLU  (bias add is free in the VALU slot under the MXU).
    h = jnp.dot(x_ref[...], w1_ref[...], preferred_element_type=jnp.float32)
    h = jnp.maximum(h + b1_ref[...], 0.0)

    # Fused mu|std head: one matmul, one bias add, then per-half nonlinearity.
    z = jnp.dot(h, wh_ref[...], preferred_element_type=jnp.float32) + bh_ref[...]
    a = mu_ref.shape[-1]  # static
    mu_ref[...] = (2.0 * jnp.tanh(z[:, :a])).astype(mu_ref.dtype)
    std_ref[...] = _softplus(z[:, a:]).astype(std_ref.dtype)


def _forward_row_batch(x, params, *, block_b):
    w1 = params["w1"]          # (state_dim, hidden)
    b1 = params["b1"]          # (1, hidden)
    wh = params["w_head"]      # (hidden, 2*action_dim)
    bh = params["b_head"]      # (1, 2*action_dim)

    B, state_dim = x.shape
    hidden = w1.shape[1]
    out2 = wh.shape[1]
    a = out2 // 2

    tb = min(block_b, _round_up(B, 8))
    if B >= _SPLIT_THRESHOLD:
        # >= 2 parallel tiles so v7x's second TensorCore has work.
        tb = min(tb, _round_up(pl.cdiv(B, 2), 8))
    grid = (pl.cdiv(B, tb),)   # ragged last tile: reads padded, stores masked

    cost = pl.CostEstimate(
        flops=2 * B * (state_dim * hidden + hidden * out2),
        transcendentals=3 * B * out2,
        bytes_accessed=4 * (x.size + w1.size + b1.size + wh.size + bh.size
                            + 2 * B * a),
    )

    mu, std = pl.pallas_call(
        _policy_kernel_rows,
        out_shape=(jax.ShapeDtypeStruct((B, a), jnp.float32),
                   jax.ShapeDtypeStruct((B, a), jnp.float32)),
        grid=grid,
        in_specs=[
            pl.BlockSpec((tb, state_dim), lambda i: (i, 0)),
            pl.BlockSpec(w1.shape, lambda i: (0, 0)),   # resident
            pl.BlockSpec(b1.shape, lambda i: (0, 0)),   # resident
            pl.BlockSpec(wh.shape, lambda i: (0, 0)),   # resident
            pl.BlockSpec(bh.shape, lambda i: (0, 0)),   # resident
        ],
        out_specs=(pl.BlockSpec((tb, a), lambda i: (i, 0)),
                   pl.BlockSpec((tb, a), lambda i: (i, 0))),
        compiler_params=pltpu.CompilerParams(
            dimension_semantics=("parallel",),
            vmem_limit_bytes=32 * 1024 * 1024,
        ),
        cost_estimate=cost,
    )(x, w1, b1, wh, bh)
    return mu, std


# ---------------------------------------------------------------------------
# Path 2: batch on the LANE axis (large B) -> lane-dense DMAs and stores.
# ---------------------------------------------------------------------------
def _policy_kernel_lanes(xt_ref, w1t_ref, b1t_ref, wht_ref, bht_ref,
                         mut_ref, stdt_ref):
    # h^T = relu(W1 @ x^T + b1)           : (hidden, tb)
    h = jnp.dot(w1t_ref[...], xt_ref[...], preferred_element_type=jnp.float32)
    h = jnp.maximum(h + b1t_ref[...], 0.0)

    # z^T = W_head @ h^T + b_head         : (2*action_dim, tb)
    z = jnp.dot(wht_ref[...], h, preferred_element_type=jnp.float32) + bht_ref[...]
    a = mut_ref.shape[0]  # static
    mut_ref[...] = (2.0 * jnp.tanh(z[:a, :])).astype(mut_ref.dtype)
    stdt_ref[...] = _softplus(z[a:, :]).astype(stdt_ref.dtype)


def _forward_lane_batch(x, params, *, block_b):
    w1t = params["w1_t"]         # (hidden, state_dim)
    b1c = params["b1_col"]       # (hidden, 1)
    wht = params["w_head_t"]     # (2*action_dim, hidden)
    bhc = params["b_head_col"]   # (2*action_dim, 1)

    B, state_dim = x.shape
    hidden = w1t.shape[0]
    out2 = wht.shape[0]
    a = out2 // 2

    # Lane tile: either the whole batch (block dim == full array dim is always
    # legal) or a multiple of 128; split into >= 2 tiles for megacore when big.
    if B >= _SPLIT_THRESHOLD:
        tb = min(_round_up(block_b, 128), _round_up(pl.cdiv(B, 2), 128))
    else:
        tb = B
    grid = (pl.cdiv(B, tb),)

    xt = x.T   # (state_dim, B): layout plumbing so the batch is lane-dense

    cost = pl.CostEstimate(
        flops=2 * B * (state_dim * hidden + hidden * out2),
        transcendentals=3 * B * out2,
        bytes_accessed=4 * (x.size + w1t.size + b1c.size + wht.size + bhc.size
                            + 2 * B * a),
    )

    mut, stdt = pl.pallas_call(
        _policy_kernel_lanes,
        out_shape=(jax.ShapeDtypeStruct((a, B), jnp.float32),
                   jax.ShapeDtypeStruct((a, B), jnp.float32)),
        grid=grid,
        in_specs=[
            pl.BlockSpec((state_dim, tb), lambda i: (0, i)),
            pl.BlockSpec(w1t.shape, lambda i: (0, 0)),   # resident
            pl.BlockSpec(b1c.shape, lambda i: (0, 0)),   # resident
            pl.BlockSpec(wht.shape, lambda i: (0, 0)),   # resident
            pl.BlockSpec(bhc.shape, lambda i: (0, 0)),   # resident
        ],
        out_specs=(pl.BlockSpec((a, tb), lambda i: (0, i)),
                   pl.BlockSpec((a, tb), lambda i: (0, i))),
        compiler_params=pltpu.CompilerParams(
            dimension_semantics=("parallel",),
            vmem_limit_bytes=32 * 1024 * 1024,
        ),
        cost_estimate=cost,
    )(xt, w1t, b1c, wht, bhc)

    return mut.T, stdt.T


# ---------------------------------------------------------------------------
# Public wrapper.
# ---------------------------------------------------------------------------
def policy_net_continuous(x, params, *, block_b=4096, lane_batch=None):
    """x: (B, state_dim) float32.  params: dict from init_params().
    Returns (mu, std), each (B, action_dim)."""
    B = x.shape[0]
    if lane_batch is None:
        lane_batch = B >= _LANE_BATCH_THRESHOLD
    if lane_batch:
        return _forward_lane_batch(x, params, block_b=block_b)
    return _forward_row_batch(x, params, block_b=block_b)


def init_params(key, state_dim, hidden_dim, action_dim):
    """torch.nn.Linear-style init (U[-1/sqrt(fan_in), 1/sqrt(fan_in)]).
    Weights stored pre-transposed to (in, out); both kernel layouts packed."""
    ks = jax.random.split(key, 6)

    def lin(kw, kb, fan_in, fan_out):
        bound = float(fan_in) ** -0.5
        w = jax.random.uniform(kw, (fan_in, fan_out), jnp.float32, -bound, bound)
        b = jax.random.uniform(kb, (1, fan_out), jnp.float32, -bound, bound)
        return w, b

    w1, b1 = lin(ks[0], ks[1], state_dim, hidden_dim)
    wmu, bmu = lin(ks[2], ks[3], hidden_dim, action_dim)
    wstd, bstd = lin(ks[4], ks[5], hidden_dim, action_dim)

    w_head = jnp.concatenate([wmu, wstd], axis=1)    # (hidden, 2*action_dim)
    b_head = jnp.concatenate([bmu, bstd], axis=1)    # (1, 2*action_dim)

    return dict(
        # row-batch (sublane) layout
        w1=w1, b1=b1, w_head=w_head, b_head=b_head,
        # lane-batch (transposed) layout
        w1_t=w1.T, b1_col=b1.T, w_head_t=w_head.T, b_head_col=b_head.T,
        # raw form (reference only)
        raw=dict(w1=w1, b1=b1, wmu=wmu, bmu=bmu, wstd=wstd, bstd=bstd),
    )


def reference(x, raw):
    h = jnp.maximum(x @ raw["w1"] + raw["b1"], 0.0)
    mu = 2.0 * jnp.tanh(h @ raw["wmu"] + raw["bmu"])
    std = jax.nn.softplus(h @ raw["wstd"] + raw["bstd"])
    return mu, std


if __name__ == "__main__":
    # Pendulum-like policy net: batch=8, state_dim=4, hidden=32, action_dim=2
    B, state_dim, hidden_dim, action_dim = 8, 4, 32, 2

    key = jax.random.PRNGKey(0)
    k_x, k_p = jax.random.split(key)
    x = jax.random.normal(k_x, (B, state_dim), jnp.float32)
    params = init_params(k_p, state_dim, hidden_dim, action_dim)

    mu_ref, std_ref = reference(x, params["raw"])

    # Default (row-batch) path — what runs at this small size.
    mu, std = jax.jit(policy_net_continuous)(x, params)
    jax.block_until_ready((mu, std))
    assert mu.shape == (B, action_dim) and std.shape == (B, action_dim)
    assert jnp.allclose(mu, mu_ref, atol=1e-5, rtol=1e-5)
    assert jnp.allclose(std, std_ref, atol=1e-5, rtol=1e-5)

    # Lane-dense (batch-on-lanes) path used for large batches — exercised here
    # at the small shape to verify it compiles and matches the reference.
    mu2, std2 = jax.jit(
        lambda xx, pp: policy_net_continuous(xx, pp, lane_batch=True)
    )(x, params)
    jax.block_until_ready((mu2, std2))
    assert jnp.allclose(mu2, mu_ref, atol=1e-5, rtol=1e-5)
    assert jnp.allclose(std2, std_ref, atol=1e-5, rtol=1e-5)

    print("KERNEL_OK")
</pallas_src>

<mosaic_0001>
module attributes {stable_mosaic.version = 11 : i64} {
  func.func @_policy_kernel_rows(%arg0: i32, %arg1: memref<8x4xf32, #tpu.memory_space<vmem>>, %arg2: memref<4x32xf32, #tpu.memory_space<vmem>>, %arg3: memref<1x32xf32, #tpu.memory_space<vmem>>, %arg4: memref<32x4xf32, #tpu.memory_space<vmem>>, %arg5: memref<1x4xf32, #tpu.memory_space<vmem>>, %arg6: memref<8x2xf32, #tpu.memory_space<vmem>>, %arg7: memref<8x2xf32, #tpu.memory_space<vmem>>) attributes {dimension_semantics = [#tpu.dimension_semantics<parallel>], iteration_bounds = array<i64: 1>, scalar_prefetch = 0 : i64, scratch_operands = 0 : i64, tpu.core_type = #tpu.core_type<tc>, window_params = [{transform_indices = @transform_0, window_bounds = array<i64: 8, 4>}, {pipeline_mode = #tpu.pipeline_mode<synchronous>, transform_indices = @transform_1, window_bounds = array<i64: 4, 32>}, {pipeline_mode = #tpu.pipeline_mode<synchronous>, transform_indices = @transform_2, window_bounds = array<i64: 1, 32>}, {pipeline_mode = #tpu.pipeline_mode<synchronous>, transform_indices = @transform_3, window_bounds = array<i64: 32, 4>}, {pipeline_mode = #tpu.pipeline_mode<synchronous>, transform_indices = @transform_4, window_bounds = array<i64: 1, 4>}, {transform_indices = @transform_5, window_bounds = array<i64: 8, 2>}, {transform_indices = @transform_6, window_bounds = array<i64: 8, 2>}]} {
    %c0 = arith.constant 0 : index
    %c0_0 = arith.constant 0 : index
    %0 = vector.load %arg1[%c0, %c0_0] : memref<8x4xf32, #tpu.memory_space<vmem>>, vector<8x4xf32>
    %c0_1 = arith.constant 0 : index
    %c0_2 = arith.constant 0 : index
    %1 = vector.load %arg2[%c0_1, %c0_2] : memref<4x32xf32, #tpu.memory_space<vmem>>, vector<4x32xf32>
    %cst = arith.constant dense<0.000000e+00> : vector<8x32xf32>
    %2 = tpu.matmul %0, %1, %cst {dimension_numbers = #tpu.dot_dimension_numbers<[1], [0], [0], [1], [0, 0, 1, 1], [], []>} : vector<8x4xf32>, vector<4x32xf32>, vector<8x32xf32> -> vector<8x32xf32>
    %c0_3 = arith.constant 0 : index
    %c0_4 = arith.constant 0 : index
    %3 = vector.load %arg3[%c0_3, %c0_4] : memref<1x32xf32, #tpu.memory_space<vmem>>, vector<1x32xf32>
    %4 = vector.broadcast %3 : vector<1x32xf32> to vector<8x32xf32>
    %5 = arith.addf %2, %4 : vector<8x32xf32>
    %cst_5 = arith.constant 0.000000e+00 : f32
    %6 = vector.broadcast %cst_5 : f32 to vector<8x32xf32>
    %7 = arith.maximumf %5, %6 : vector<8x32xf32>
    %c0_6 = arith.constant 0 : index
    %c0_7 = arith.constant 0 : index
    %8 = vector.load %arg4[%c0_6, %c0_7] : memref<32x4xf32, #tpu.memory_space<vmem>>, vector<32x4xf32>
    %cst_8 = arith.constant dense<0.000000e+00> : vector<8x4xf32>
    %9 = tpu.matmul %7, %8, %cst_8 {dimension_numbers = #tpu.dot_dimension_numbers<[1], [0], [0], [1], [0, 0, 1, 1], [], []>} : vector<8x32xf32>, vector<32x4xf32>, vector<8x4xf32> -> vector<8x4xf32>
    %c0_9 = arith.constant 0 : index
    %c0_10 = arith.constant 0 : index
    %10 = vector.load %arg5[%c0_9, %c0_10] : memref<1x4xf32, #tpu.memory_space<vmem>>, vector<1x4xf32>
    %11 = vector.broadcast %10 : vector<1x4xf32> to vector<8x4xf32>
    %12 = arith.addf %9, %11 : vector<8x4xf32>
    %13 = vector.extract_strided_slice %12 {offsets = [0, 0], sizes = [8, 2], strides = [1, 1]} : vector<8x4xf32> to vector<8x2xf32>
    %14 = math.tanh %13 : vector<8x2xf32>
    %cst_11 = arith.constant 2.000000e+00 : f32
    %15 = vector.broadcast %cst_11 : f32 to vector<8x2xf32>
    %16 = arith.mulf %15, %14 : vector<8x2xf32>
    %c0_12 = arith.constant 0 : index
    %c0_13 = arith.constant 0 : index
    %17 = vector.load %arg6[%c0_12, %c0_13] : memref<8x2xf32, #tpu.memory_space<vmem>>, vector<8x2xf32>
    tpu.vector_store %arg6[%c0_12, %c0_13], %16 {strides = array<i32>} : memref<8x2xf32, #tpu.memory_space<vmem>>, vector<8x2xf32>,
    %18 = vector.extract_strided_slice %12 {offsets = [0, 2], sizes = [8, 2], strides = [1, 1]} : vector<8x4xf32> to vector<8x2xf32>
    %cst_14 = arith.constant 0.000000e+00 : f32
    %19 = vector.broadcast %cst_14 : f32 to vector<8x2xf32>
    %20 = arith.maximumf %18, %19 : vector<8x2xf32>
    %21 = math.absf %18 : vector<8x2xf32>
    %cst_15 = arith.constant 0.000000e+00 : f32
    %22 = vector.broadcast %cst_15 : f32 to vector<8x2xf32>
    %23 = arith.subf %22, %21 : vector<8x2xf32>
    %24 = math.exp %23 : vector<8x2xf32>
    %25 = math.log1p %24 : vector<8x2xf32>
    %26 = arith.addf %20, %25 : vector<8x2xf32>
    %c0_16 = arith.constant 0 : index
    %c0_17 = arith.constant 0 : index
    %27 = vector.load %arg7[%c0_16, %c0_17] : memref<8x2xf32, #tpu.memory_space<vmem>>, vector<8x2xf32>
    tpu.vector_store %arg7[%c0_16, %c0_17], %26 {strides = array<i32>} : memref<8x2xf32, #tpu.memory_space<vmem>>, vector<8x2xf32>,
    return
  }
  func.func @transform_0(%arg0: i32) -> (i32, i32) {
    %c0_i32 = arith.constant 0 : i32
    %c0_i32_0 = arith.constant 0 : i32
    return %arg0, %c0_i32 : i32, i32
  }
  func.func @transform_1(%arg0: i32) -> (i32, i32) {
    %c0_i32 = arith.constant 0 : i32
    %c0_i32_0 = arith.constant 0 : i32
    %c0_i32_1 = arith.constant 0 : i32
    return %c0_i32, %c0_i32_0 : i32, i32
  }
  func.func @transform_2(%arg0: i32) -> (i32, i32) {
    %c0_i32 = arith.constant 0 : i32
    %c0_i32_0 = arith.constant 0 : i32
    %c0_i32_1 = arith.constant 0 : i32
    return %c0_i32, %c0_i32_0 : i32, i32
  }
  func.func @transform_3(%arg0: i32) -> (i32, i32) {
    %c0_i32 = arith.constant 0 : i32
    %c0_i32_0 = arith.constant 0 : i32
    %c0_i32_1 = arith.constant 0 : i32
    return %c0_i32, %c0_i32_0 : i32, i32
  }
  func.func @transform_4(%arg0: i32) -> (i32, i32) {
    %c0_i32 = arith.constant 0 : i32
    %c0_i32_0 = arith.constant 0 : i32
    %c0_i32_1 = arith.constant 0 : i32
    return %c0_i32, %c0_i32_0 : i32, i32
  }
  func.func @transform_5(%arg0: i32) -> (i32, i32) {
    %c0_i32 = arith.constant 0 : i32
    %c0_i32_0 = arith.constant 0 : i32
    return %arg0, %c0_i32 : i32, i32
  }
  func.func @transform_6(%arg0: i32) -> (i32, i32) {
    %c0_i32 = arith.constant 0 : i32
    %c0_i32_0 = arith.constant 0 : i32
    return %arg0, %c0_i32 : i32, i32
  }
}

</mosaic_0001>

<bundles_post_ra>
// kernel: policy_net_continuous.1
= control target key start
LH: loop header
LB: loop body
LE: loop exit
PB: predicated region body
PF: predicated region fallthrough
CT: control target
= control target key end

     0   :  { %vm35_vm0 = vcmask 1043456   ;;  %vm31_vm1 = vcmask 31744   ;;  %v271_v0 = vmov 0.0   ;;  %vm272_vm2 = vmmov 0   ;;  %s342_s1 = inlined_call_operand.vmem [shape: f32[4,32], index: 1, kind: input, shape index: {}]   ;;  %s343_s0 = inlined_call_operand.vmem [shape: f32[8,4], index: 0, kind: input, shape index: {}]   ;;  %s344_s3 = inlined_call_operand.vmem [shape: f32[32,4], index: 3, kind: input, shape index: {}]   ;;  %s345_s2 = inlined_call_operand.vmem [shape: f32[1,32], index: 2, kind: input, shape index: {}]   ;;  %s346_s4 = inlined_call_operand.vmem [shape: f32[1,4], index: 4, kind: input, shape index: {}]   ;;  %s347_s5 = inlined_call_operand.vmem [shape: f32[8,2], index: 5, kind: output, shape index: {0}]   ;;  %s348_s6 = inlined_call_operand.vmem [shape: f32[8,2], index: 6, kind: output, shape index: {1}]  }
   0x1   :  { %239 = vmatprep.subr.mxu0 %v271_v0  ;;  %v23_v1 = vld [vmem:[%s342_s1] sm:$0xf]  ;;  %241 = vmatprep.mubr.msk.f32.mxu0 %vm272_vm2, %v271_v0  ;;  %v273_v4 = vmov 0.0|0.0   ;;  %v111_v5 = vld [vmem:[%s344_s3 + $0x8] sm:$0xff]  ;;  %v112_v7 = vld [vmem:[%s344_s3 + $0x10] sm:$0xff]  ;;  %vm121_vm3 = vcmask 261120  }
   0x2   :  { %v22_v2 = vld [vmem:[%s343_s0] sm:$0xff]  ;;  %240 = vmatpush3.msk.msra.mxu0 %vm35_vm0, %v23_v1  ;;  %255 = vmatprep.subr.bf16.mxu1 %v273_v4  ;;  %v113_v8 = vld [vmem:[%s344_s3 + $0x18] sm:$0xff]  ;;  %vm197_vm4 = vcmask 15360  }
   0x3   :  { %v110_v3 = vld [vmem:[%s344_s3] sm:$0xff]  ;;  %242 = vmatmul.mubr.msk.f32.vlgmr.msra.gmra.mrb[0].mxu0 %vm31_vm1, %v22_v2  ;;  %252 = vmatprep.mubr.msk.f32.mxu1 %vm272_vm2, %v271_v0  ;;  %v259_v9 = vpack.c.bf16 %v113_v8, %v112_v7 }
   0x4   :  { %v256_v6 = vpack.c.bf16 %v111_v5, %v110_v3  ;;  %v227_v10 = vld [vmem:[%s345_s2] ss:$0 sm:$0xff] }
   0x5   :  { %v230_v15 = vld [vmem:[%s346_s4] ss:$0 sm:$0xff]  ;;  %s274_s4 = smov 126  }
   0x6   :  { %257 = vmatpush3.bf16.msra.mxu1 %v256_v6 }
   0x7   :  { %258 = vmatprep.subr.bf16.mxu1 %v273_v4 }
   0xa   :  { %260 = vmatpush3.bf16.msra.mxu1 %v259_v9 }
  0xd6   :  { %v105_v11 = vpop.f32.mrb[0].mxu0 }
  0xd7   :  { %v106_v12 = vadd.f32 %v227_v10, %v105_v11  ;;  %v243_v13 = vpop.f32.mrb[1].mxu0 }
  0xd9   :  { %v109_v14 = vmax.f32 %v106_v12, 0.0 }
  0xdb   :  { %253 = vmatmul.mubr.msk.f32.vlgmr.msra.gmra.mrb[0].mxu1 %vm121_vm3, %v109_v14 }
 0x1ae   :  { %v191_v16 = vpop.f32.mrb[0].mxu1 }
 0x1af   :  { %v192_v17 = vadd.f32 %v230_v15, %v191_v16  ;;  %v254_v18 = vpop.f32.mrb[1].mxu1 }
 0x1b1   :  { %265 = vtanh.f32 %v192_v17  ;;  %v200_v19 = vand.u32 2147483647, %v192_v17  ;;  %v199_v32 = vmax.f32 %v192_v17, 0.0 }
 0x1b3   :  { %v201_v20 = vsub.f32 0.0, %v200_v19 }
 0x1b5   :  { %v202_v21 = vmul.f32 1.442695, %v201_v20 }
 0x1b7   :  { %267 = vpow2.f32 %v202_v21 }
 0x1bb   :  { %v266_v22 = vpop.eup %265 }
 0x1bc   :  { %v196_v23 = vmul.f32 2.0, %v266_v22 }
 0x1be   :  { %198 = vst.msk [vmem:[%s347_s5] sm:$0xff] %vm197_vm4, %v196_v23 }
 0x1c1   :  { %v268_v24 = vpop.eup %267 }
 0x1c2   :  { %v204_v25 = vadd.f32 1.0, %v268_v24  ;;  %v207_v26 = vmul.f32 -0.5, %v268_v24  ;;  %v210_v28 = vand.u32 2147483647, %v268_v24 }
 0x1c4   :  { %269 = vlog2.f32 %v204_v25  ;;  %v208_v27 = vadd.f32 1.0, %v207_v26  ;;  %vm211_vm5 = vcmp.lt.f32.partialorder %v210_v28, 0.0004427343 }
 0x1c6   :  { %v209_v31 = vmul.f32 %v268_v24, %v208_v27 }
 0x1ce   :  { %v270_v29 = vpop.eup %269 }
 0x1cf   :  { %v206_v30 = vmul.f32 0.6931472, %v270_v29 }
 0x1d1   :  { %v212_v33 = vsel %vm211_vm5, %v209_v31, %v206_v30 }
 0x1d2   :  { %v213_v34 = vadd.f32 %v212_v33, %v199_v32 }
 0x1d4   :  { %215 = vrot.lane.b32.xlu0 %v213_v34, %s274_s4 }
 0x246   :  { %v216_v35 = vpop.permute.xlu0 %215 }
 0x247   :  { %218 = vst.msk [vmem:[%s348_s6] sm:$0xff] %vm197_vm4, %v216_v35 }

</bundles_post_ra>
